<compile_context>
chip_gen: v6e
topology: v6e:2x2x1
jax: 0.10.0
libtpu: 0.0.40
codegen_flags: <defaults>
</compile_context>

<pallas_src>
import functools

import jax
import jax.numpy as jnp
from jax.experimental import pallas as pl
from jax.experimental.pallas import tpu as pltpu

IN_FEATURES = 784           # 28 * 28, fixed by nn.Linear(784, num_classes)
NUM_CLASSES = 10
N_PAD = 128                 # lane-dense padded class dimension
NEG_BIG = -1e30             # plain Python float: effectively -inf for the softmax, no NaNs


def _round_up(x, m):
    return ((x + m - 1) // m) * m


def _cdiv(a, b):
    return -(-a // b)


def logistic_kernel(x_ref, w_ref, b_ref, o_ref):
    # x_ref: (TB, 784) bf16   w_ref: (784, 128) bf16   b_ref: (1, 128) f32   o_ref: (TB, 128) f32
    x = x_ref[...]
    w = w_ref[...]
    b = b_ref[...]

    # Linear: bf16 operands, f32 accumulation on the MXU.
    y = jnp.dot(x, w, preferred_element_type=jnp.float32) + b

    # Fused ReLU + padded-lane mask: real classes get max(y, 0), padded lanes get "-inf"
    # so they contribute nothing to the softmax denominator.
    lane = jax.lax.broadcasted_iota(jnp.int32, y.shape, 1)
    y = jnp.where(lane < NUM_CLASSES, jnp.maximum(y, 0.0), NEG_BIG)

    # Numerically stable LogSoftmax along the last dim (f32).
    m = jnp.max(y, axis=-1, keepdims=True)
    z = y - m
    lse = jnp.log(jnp.sum(jnp.exp(z), axis=-1, keepdims=True))
    o_ref[...] = z - lse


@functools.partial(jax.jit, static_argnames=("tb",))
def single_layer_logistics(x_nchw, weight, bias, *, tb=2048):
    """x_nchw: (B, C, H, W) with C*H*W == 784; weight: (10, 784); bias: (10,)."""
    B = x_nchw.shape[0]
    # torch.flatten(x, 1) -> (B, 784); stream as bf16.
    # TODO(synk): ideally the bf16 cast fuses with the upstream producer so it costs no
    # extra HBM pass; here it fuses with the reshape under jit.
    x2d = x_nchw.reshape(B, -1).astype(jnp.bfloat16)

    # Pad weight / bias to a lane-dense 128-wide class dim (zeros; padded lanes masked in-kernel).
    w_t = weight.T.astype(jnp.float32)                                       # (784, 10)
    w_pad = jnp.zeros((IN_FEATURES, N_PAD), jnp.float32).at[:, :NUM_CLASSES].set(w_t)
    w_pad = w_pad.astype(jnp.bfloat16)                                       # (784, 128) bf16
    b_pad = jnp.zeros((1, N_PAD), jnp.float32).at[:, :NUM_CLASSES].set(
        bias.astype(jnp.float32))                                            # (1, 128) f32

    # Balanced batch tiling: tile count first, then per-tile size rounded to 16 (bf16 sublane
    # packing).  Padding waste is bounded to <16 rows per tile.
    n_tiles = max(1, _cdiv(B, tb))
    tb_eff = _round_up(_cdiv(B, n_tiles), 16)
    b_pad_rows = _round_up(B, tb_eff)
    if b_pad_rows != B:
        x2d = jnp.pad(x2d, ((0, b_pad_rows - B), (0, 0)))
    grid = (b_pad_rows // tb_eff,)

    out = pl.pallas_call(
        logistic_kernel,
        out_shape=jax.ShapeDtypeStruct((b_pad_rows, N_PAD), jnp.float32),
        grid=grid,
        in_specs=[
            pl.BlockSpec((tb_eff, IN_FEATURES), lambda i: (i, 0)),   # stream x tiles (bf16)
            pl.BlockSpec((IN_FEATURES, N_PAD), lambda i: (0, 0)),    # W resident (bf16)
            pl.BlockSpec((1, N_PAD), lambda i: (0, 0)),              # b resident (f32)
        ],
        out_specs=pl.BlockSpec((tb_eff, N_PAD), lambda i: (i, 0)),
        compiler_params=pltpu.CompilerParams(
            dimension_semantics=("parallel",),
            vmem_limit_bytes=48 << 20,
        ),
    )(x2d, w_pad, b_pad)

    return out[:B, :NUM_CLASSES]


def reference_f32(x_nchw, weight, bias):
    B = x_nchw.shape[0]
    x2d = x_nchw.reshape(B, -1).astype(jnp.float32)
    y = x2d @ weight.T + bias
    y = jnp.maximum(y, 0.0)
    return jax.nn.log_softmax(y, axis=-1)


def reference_bf16_matched(x_nchw, weight, bias):
    """Same math as the kernel: bf16 inputs, f32 accumulation / softmax."""
    B = x_nchw.shape[0]
    x2d = x_nchw.reshape(B, -1).astype(jnp.bfloat16)
    w = weight.astype(jnp.bfloat16)
    y = jnp.dot(x2d, w.T, preferred_element_type=jnp.float32) + bias.astype(jnp.float32)
    y = jnp.maximum(y, 0.0)
    return jax.nn.log_softmax(y, axis=-1)


if __name__ == "__main__":
    key = jax.random.PRNGKey(0)
    kx, kw, kb = jax.random.split(key, 3)

    # Small, deterministic example input consistent with the module: (B=2, C=1, 28, 28)
    x = jax.random.normal(kx, (2, 1, 28, 28), dtype=jnp.float32)

    # Deterministic parameter init (uniform, roughly matching nn.Linear's fan-in scale)
    bound = 1.0 / (IN_FEATURES ** 0.5)
    weight = jax.random.uniform(kw, (NUM_CLASSES, IN_FEATURES), jnp.float32, -bound, bound)
    bias = jax.random.uniform(kb, (NUM_CLASSES,), jnp.float32, -bound, bound)

    out = single_layer_logistics(x, weight, bias)
    out = jax.block_until_ready(out)
    assert out.shape == (2, NUM_CLASSES)

    ref_bf16 = jax.block_until_ready(reference_bf16_matched(x, weight, bias))
    ref_f32 = jax.block_until_ready(reference_f32(x, weight, bias))

    # Tight check against the bf16-input-matched reference (same math path as the kernel).
    assert jnp.allclose(out, ref_bf16, atol=1e-3, rtol=1e-3), "mismatch vs bf16-matched reference"
    # Loose check against the pure-f32 reference (bf16 streaming perturbs logits slightly).
    assert jnp.allclose(out, ref_f32, atol=3e-2, rtol=3e-2), "mismatch vs f32 reference"

    print("KERNEL_OK")
</pallas_src>

<mosaic_0001>
module attributes {stable_mosaic.version = 11 : i64} {
  func.func @logistic_kernel(%arg0: i32, %arg1: memref<16x784xbf16, #tpu.memory_space<vmem>>, %arg2: memref<784x128xbf16, #tpu.memory_space<vmem>>, %arg3: memref<1x128xf32, #tpu.memory_space<vmem>>, %arg4: memref<16x128xf32, #tpu.memory_space<vmem>>) attributes {dimension_semantics = [#tpu.dimension_semantics<parallel>], iteration_bounds = array<i64: 1>, scalar_prefetch = 0 : i64, scratch_operands = 0 : i64, tpu.core_type = #tpu.core_type<tc>, window_params = [{transform_indices = @transform_0, window_bounds = array<i64: 16, 784>}, {pipeline_mode = #tpu.pipeline_mode<synchronous>, transform_indices = @transform_1, window_bounds = array<i64: 784, 128>}, {pipeline_mode = #tpu.pipeline_mode<synchronous>, transform_indices = @transform_2, window_bounds = array<i64: 1, 128>}, {transform_indices = @transform_3, window_bounds = array<i64: 16, 128>}]} {
    %c0 = arith.constant 0 : index
    %c0_0 = arith.constant 0 : index
    %0 = vector.load %arg1[%c0, %c0_0] : memref<16x784xbf16, #tpu.memory_space<vmem>>, vector<16x784xbf16>
    %c0_1 = arith.constant 0 : index
    %c0_2 = arith.constant 0 : index
    %1 = vector.load %arg2[%c0_1, %c0_2] : memref<784x128xbf16, #tpu.memory_space<vmem>>, vector<784x128xbf16>
    %c0_3 = arith.constant 0 : index
    %c0_4 = arith.constant 0 : index
    %2 = vector.load %arg3[%c0_3, %c0_4] : memref<1x128xf32, #tpu.memory_space<vmem>>, vector<1x128xf32>
    %cst = arith.constant dense<0.000000e+00> : vector<16x128xf32>
    %3 = tpu.matmul %0, %1, %cst {dimension_numbers = #tpu.dot_dimension_numbers<[1], [0], [0], [1], [0, 0, 1, 1], [], []>} : vector<16x784xbf16>, vector<784x128xbf16>, vector<16x128xf32> -> vector<16x128xf32>
    %4 = vector.broadcast %2 : vector<1x128xf32> to vector<16x128xf32>
    %5 = arith.addf %3, %4 : vector<16x128xf32>
    %6 = tpu.iota {dimensions = array<i32: 1>} : vector<16x128xi32>
    %c10_i32 = arith.constant 10 : i32
    %7 = vector.broadcast %c10_i32 : i32 to vector<16x128xi32>
    %8 = arith.cmpi slt, %6, %7 : vector<16x128xi32>
    %cst_5 = arith.constant 0.000000e+00 : f32
    %9 = vector.broadcast %cst_5 : f32 to vector<16x128xf32>
    %10 = arith.maximumf %5, %9 : vector<16x128xf32>
    %cst_6 = arith.constant -1.000000e+30 : f32
    %11 = vector.broadcast %cst_6 : f32 to vector<16x128xf32>
    %12 = arith.select %8, %10, %11 : vector<16x128xi1>, vector<16x128xf32>
    %cst_7 = arith.constant dense<0xFF800000> : vector<16xf32>
    %13 = vector.multi_reduction <maximumf>, %12, %cst_7 [1] : vector<16x128xf32> to vector<16xf32>
    %14 = vector.shape_cast %13 : vector<16xf32> to vector<16x1xf32>
    %15 = vector.broadcast %14 : vector<16x1xf32> to vector<16x128xf32>
    %16 = arith.subf %12, %15 : vector<16x128xf32>
    %17 = math.exp %16 : vector<16x128xf32>
    %cst_8 = arith.constant dense<0.000000e+00> : vector<16xf32>
    %18 = vector.multi_reduction <add>, %17, %cst_8 [1] : vector<16x128xf32> to vector<16xf32>
    %19 = vector.shape_cast %18 : vector<16xf32> to vector<16x1xf32>
    %20 = math.log %19 : vector<16x1xf32>
    %21 = vector.broadcast %20 : vector<16x1xf32> to vector<16x128xf32>
    %22 = arith.subf %16, %21 : vector<16x128xf32>
    %c0_9 = arith.constant 0 : index
    %c0_10 = arith.constant 0 : index
    %23 = vector.load %arg4[%c0_9, %c0_10] : memref<16x128xf32, #tpu.memory_space<vmem>>, vector<16x128xf32>
    tpu.vector_store %arg4[%c0_9, %c0_10], %22 {strides = array<i32>} : memref<16x128xf32, #tpu.memory_space<vmem>>, vector<16x128xf32>,
    return
  }
  func.func @transform_0(%arg0: i32) -> (i32, i32) {
    %c0_i32 = arith.constant 0 : i32
    %c0_i32_0 = arith.constant 0 : i32
    return %arg0, %c0_i32 : i32, i32
  }
  func.func @transform_1(%arg0: i32) -> (i32, i32) {
    %c0_i32 = arith.constant 0 : i32
    %c0_i32_0 = arith.constant 0 : i32
    %c0_i32_1 = arith.constant 0 : i32
    return %c0_i32, %c0_i32_0 : i32, i32
  }
  func.func @transform_2(%arg0: i32) -> (i32, i32) {
    %c0_i32 = arith.constant 0 : i32
    %c0_i32_0 = arith.constant 0 : i32
    %c0_i32_1 = arith.constant 0 : i32
    return %c0_i32, %c0_i32_0 : i32, i32
  }
  func.func @transform_3(%arg0: i32) -> (i32, i32) {
    %c0_i32 = arith.constant 0 : i32
    %c0_i32_0 = arith.constant 0 : i32
    return %arg0, %c0_i32 : i32, i32
  }
}

</mosaic_0001>

<bundles_post_ra>
// kernel: single_layer_logistics.1
= control target key start
LH: loop header
LB: loop body
LE: loop exit
PB: predicated region body
PF: predicated region fallthrough
CT: control target
= control target key end

     0   :  { %v859_v38 = vmov 0.0   ;;  %vm860_vm0 = vmmov 0   ;;  %vm457_vm1 = vcmask 130048   ;;  %s1058_s1 = inlined_call_operand.vmem [shape: bf16[784,128], index: 1, kind: input, shape index: {}]   ;;  %s1059_s0 = inlined_call_operand.vmem [shape: bf16[16,784], index: 0, kind: input, shape index: {}]   ;;  %s1060_s2 = inlined_call_operand.vmem [shape: f32[1,128], index: 2, kind: input, shape index: {}]   ;;  %s1061_s3 = inlined_call_operand.vmem [shape: f32[16,128], index: 3, kind: output, shape index: {}]  }
   0x1   :  { %v792_v0 = vld [vmem:[%s1058_s1 + $0x78] sm:$0xff]   ;;  %v796_v4 = vld [vmem:[%s1058_s1 + $0x70] sm:$0xff]   ;;  %v800_v8 = vld [vmem:[%s1058_s1 + $0x68] sm:$0xff]  }
   0x2   :  { %v793_v1 = vld [vmem:[%s1058_s1 + $0x38] sm:$0xff]   ;;  %716 = vmatprep.subr.bf16.mxu0 %v792_v0  ;;  %v797_v5 = vld [vmem:[%s1058_s1 + $0x30] sm:$0xff]   ;;  %v801_v9 = vld [vmem:[%s1058_s1 + $0x28] sm:$0xff]  }
   0x3   :  { %v794_v2 = vld [vmem:[%s1058_s1 + $0xf8] sm:$0xff]   ;;  %717 = vmatpush3.bf16.msra.mxu0 %v793_v1  ;;  %v798_v6 = vld [vmem:[%s1058_s1 + $0xf0] sm:$0xff]   ;;  %v802_v10 = vld [vmem:[%s1058_s1 + $0xe8] sm:$0xff]  }
   0x4   :  { %v795_v3 = vld [vmem:[%s1058_s1 + $0xb8] sm:$0xff]   ;;  %738 = vmatprep.subr.bf16.mxu1 %v794_v2  ;;  %718 = vmatprep.subr.bf16.mxu0 %v796_v4  ;;  %v799_v7 = vld [vmem:[%s1058_s1 + $0xb0] sm:$0xff]   ;;  %v803_v11 = vld [vmem:[%s1058_s1 + $0xa8] sm:$0xff]  }
   0x5   :  { %739 = vmatpush3.bf16.msra.mxu1 %v795_v3  ;;  %v804_v12 = vld [vmem:[%s1058_s1 + $0x60] sm:$0xff]   ;;  %v808_v16 = vld [vmem:[%s1058_s1 + $0x58] sm:$0xff]   ;;  %v812_v20 = vld [vmem:[%s1058_s1 + $0x50] sm:$0xff]  }
   0x6   :  { %740 = vmatprep.subr.bf16.mxu1 %v798_v6  ;;  %v805_v13 = vld [vmem:[%s1058_s1 + $0x20] sm:$0xff]   ;;  %v809_v17 = vld [vmem:[%s1058_s1 + $0x18] sm:$0xff]   ;;  %v813_v21 = vld [vmem:[%s1058_s1 + $0x10] sm:$0xff]  }
   0x7   :  { %719 = vmatpush3.bf16.msra.mxu0 %v797_v5  ;;  %v806_v14 = vld [vmem:[%s1058_s1 + $0xe0] sm:$0xff]   ;;  %v810_v18 = vld [vmem:[%s1058_s1 + $0xd8] sm:$0xff]   ;;  %v814_v22 = vld [vmem:[%s1058_s1 + $0xd0] sm:$0xff]  }
   0x8   :  { %720 = vmatprep.subr.bf16.mxu0 %v800_v8  ;;  %v807_v15 = vld [vmem:[%s1058_s1 + $0xa0] sm:$0xff]   ;;  %v811_v19 = vld [vmem:[%s1058_s1 + $0x98] sm:$0xff]   ;;  %v815_v23 = vld [vmem:[%s1058_s1 + $0x90] sm:$0xff]  }
   0x9   :  { %741 = vmatpush3.bf16.msra.mxu1 %v799_v7  ;;  %v816_v24 = vld [vmem:[%s1058_s1 + $0x48] sm:$0xff]   ;;  %v820_v28 = vld [vmem:[%s1058_s1 + $0x40] sm:$0xff]   ;;  %v827_v34 = vld [vmem:[%s1058_s1 + $0x178] sm:$0xff]  }
   0xa   :  { %742 = vmatprep.subr.bf16.mxu1 %v802_v10  ;;  %v817_v25 = vld [vmem:[%s1058_s1 + $0x8] sm:$0xff]   ;;  %v821_v29 = vld [vmem:[%s1058_s1] sm:$0xff]   ;;  %v831_v37 = vld [vmem:[%s1058_s1 + $0x138] sm:$0xff]  }
   0xb   :  { %721 = vmatpush3.bf16.msra.mxu0 %v801_v9  ;;  %v818_v26 = vld [vmem:[%s1058_s1 + $0xc8] sm:$0xff]   ;;  %v822_v30 = vld [vmem:[%s1058_s1 + $0xc0] sm:$0xff]   ;;  %v832_v39 = vld [vmem:[%s1058_s1 + $0x170] sm:$0xff]  }
   0xc   :  { %722 = vmatprep.subr.bf16.mxu0 %v804_v12  ;;  %v819_v27 = vld [vmem:[%s1058_s1 + $0x88] sm:$0xff]   ;;  %v823_v31 = vld [vmem:[%s1059_s0] ss:$28 sps:$4 sm:$0xff]   ;;  %v833_v40 = vld [vmem:[%s1058_s1 + $0x130] sm:$0xff]  }
   0xd   :  { %743 = vmatpush3.bf16.msra.mxu1 %v803_v11  ;;  %v825_v32 = vld [vmem:[%s1059_s0 + $0x4] ss:$28 sps:$4 sm:$0xff]   ;;  %v830_v36 = vld [vmem:[%s1059_s0 + $0xc] ss:$28 sps:$4 sm:$0xff]   ;;  %v838_v45 = vld [vmem:[%s1058_s1 + $0x158] sm:$0xff]   ;;  %v625_v11 = vlaneseq }
   0xe   :  { %744 = vmatprep.subr.bf16.mxu1 %v806_v14  ;;  %v826_v33 = vld [vmem:[%s1058_s1 + $0x80] sm:$0xff]   ;;  %493 = vmatprep.mubr.bf16.mxu0 %v825_v32  ;;  %v834_v41 = vld [vmem:[%s1058_s1 + $0x168] sm:$0xff]   ;;  %v839_v46 = vld [vmem:[%s1058_s1 + $0x118] sm:$0xff]  }
   0xf   :  { %723 = vmatpush3.bf16.msra.mxu0 %v805_v13  ;;  %v828_v35 = vld [vmem:[%s1059_s0 + $0x8] ss:$28 sps:$4 sm:$0xff]   ;;  %534 = vmatprep.mubr.bf16.mxu1 %v830_v36  ;;  %v840_v47 = vld [vmem:[%s1058_s1 + $0x150] sm:$0xff]   ;;  %v658_v5 = vld [vmem:[%s1060_s2] ss:$0 sm:$0xff] }
  0x10   :  { %724 = vmatprep.subr.bf16.mxu0 %v808_v16  ;;  %v835_v42 = vld [vmem:[%s1058_s1 + $0x128] sm:$0xff]   ;;  %v836_v43 = vld [vmem:[%s1058_s1 + $0x160] sm:$0xff]   ;;  %v849_v49 = vld [vmem:[%s1059_s0 + $0x14] ss:$28 sps:$4 sm:$0xff]  }
  0x11   :  { %745 = vmatpush3.bf16.msra.mxu1 %v807_v15  ;;  %v837_v44 = vld [vmem:[%s1058_s1 + $0x120] sm:$0xff]   ;;  %v850_v50 = vld [vmem:[%s1059_s0 + $0x18] ss:$28 sps:$4 sm:$0xff]   ;;  %v842_v52 = vld [vmem:[%s1058_s1 + $0x148] sm:$0xff]  }
  0x12   :  { %746 = vmatprep.subr.bf16.mxu1 %v810_v18  ;;  %v846_v48 = vld [vmem:[%s1058_s1 + $0x180] sm:$0xff]   ;;  %v841_v51 = vld [vmem:[%s1058_s1 + $0x110] sm:$0xff]   ;;  %v843_v53 = vld [vmem:[%s1058_s1 + $0x108] sm:$0xff]   ;;  %v626_v18 = vand.u32 127, %v625_v11 }
  0x13   :  { %725 = vmatpush3.bf16.msra.mxu0 %v809_v17  ;;  %v844_v54 = vld [vmem:[%s1058_s1 + $0x140] sm:$0xff]   ;;  %v847_v56 = vld [vmem:[%s1059_s0 + $0x10] ss:$28 sps:$4 sm:$0xff]  }
  0x14   :  { %726 = vmatprep.subr.bf16.mxu0 %v812_v20  ;;  %v845_v55 = vld [vmem:[%s1058_s1 + $0x100] sm:$0xff]   ;;  %vm627_vm2 = vcmp.lt.s32.totalorder %v626_v18, 10 }
  0x15   :  { %747 = vmatpush3.bf16.msra.mxu1 %v811_v19 }
  0x16   :  { %748 = vmatprep.subr.bf16.mxu1 %v814_v22 }
  0x17   :  { %727 = vmatpush3.bf16.msra.mxu0 %v813_v21 }
  0x18   :  { %728 = vmatprep.subr.bf16.mxu0 %v816_v24 }
  0x19   :  { %749 = vmatpush3.bf16.msra.mxu1 %v815_v23 }
  0x1a   :  { %750 = vmatprep.subr.bf16.mxu1 %v818_v26 }
  0x1b   :  { %729 = vmatpush3.bf16.msra.mxu0 %v817_v25 }
  0x1c   :  { %730 = vmatprep.subr.bf16.mxu0 %v820_v28 }
  0x1d   :  { %751 = vmatpush3.bf16.msra.mxu1 %v819_v27 }
  0x1e   :  { %752 = vmatprep.subr.bf16.mxu1 %v822_v30 }
  0x1f   :  { %731 = vmatpush3.bf16.msra.mxu0 %v821_v29 }
  0x20   :  { %760 = vmatprep.subr.bf16.mxu0 %v827_v34 }
  0x21   :  { %753 = vmatpush3.bf16.msra.mxu1 %v826_v33 }
  0x22   :  { %494 = vmatmul.mubr.bf16.vlgmr.msra.gmra.mxu0 %v823_v31  ;;  %784 = vmatprep.subr.bf16.mxu1 %v859_v38 }
  0x23   :  { %761 = vmatpush3.bf16.msra.mxu0 %v831_v37  ;;  %575 = vmatprep.mubr.bf16.mxu0 %v849_v49 }
  0x24   :  { %535 = vmatmul.mubr.bf16.vlgmr.msra.gmra.mxu1 %v828_v35  ;;  %762 = vmatprep.subr.bf16.mxu0 %v832_v39 }
  0x25   :  { %786 = vmatprep.mubr.msk.bf16.mxu1 %vm860_vm0, %v859_v38  ;;  %785 = vmatpush3.bf16.msra.mxu1 %v846_v48 }
  0x27   :  { %763 = vmatpush3.bf16.msra.mxu0 %v833_v40 }
  0x28   :  { %764 = vmatprep.subr.bf16.mxu0 %v834_v41 }
  0x2b   :  { %765 = vmatpush3.bf16.msra.mxu0 %v835_v42 }
  0x2c   :  { %766 = vmatprep.subr.bf16.mxu0 %v836_v43  ;;  %787 = vmatmul.mubr.msk.bf16.vlgmr.msra.gmra.mxu1 %vm457_vm1, %v850_v50 }
  0x2f   :  { %767 = vmatpush3.bf16.msra.mxu0 %v837_v44 }
  0x30   :  { %768 = vmatprep.subr.bf16.mxu0 %v838_v45 }
  0x33   :  { %769 = vmatpush3.bf16.msra.mxu0 %v839_v46 }
  0x34   :  { %770 = vmatprep.subr.bf16.mxu0 %v840_v47 }
  0x37   :  { %771 = vmatpush3.bf16.msra.mxu0 %v841_v51 }
  0x38   :  { %772 = vmatprep.subr.bf16.mxu0 %v842_v52 }
  0x3b   :  { %773 = vmatpush3.bf16.msra.mxu0 %v843_v53 }
  0x3c   :  { %774 = vmatprep.subr.bf16.mxu0 %v844_v54 }
  0x3f   :  { %775 = vmatpush3.bf16.msra.mxu0 %v845_v55 }
  0x42   :  { %576 = vmatmul.mubr.bf16.vlgmr.msra.gmra.mxu0 %v847_v56 }
  0xe2   :  { %v732_v60 = vpop.f32.mrf.mxu0 }
  0xe4   :  { %v754_v57 = vpop.f32.mrf.mxu1  ;;  %v733_v63 = vpop.f32.mrf.mxu0 }
  0xe5   :  { %v734_v4 = vadd.f32 %v733_v63, %v732_v60 }
  0xe6   :  { %v755_v58 = vpop.f32.mrf.mxu1  ;;  %v735_v2 = vpop.f32.mrf.mxu0 }
  0xe7   :  { %v496_v7 = vadd.f32 %v734_v4, %v658_v5  ;;  %v756_v8 = vadd.f32 %v755_v58, %v754_v57 }
  0xe8   :  { %v757_v59 = vpop.f32.mrf.mxu1  ;;  %v736_v6 = vpop.f32.mrf.mxu0 }
  0xe9   :  { %v737_v9 = vadd.f32 %v736_v6, %v735_v2  ;;  %v537_v13 = vadd.f32 %v756_v8, %v496_v7 }
  0xea   :  { %v758_v61 = vpop.f32.mrf.mxu1 }
  0xeb   :  { %v499_v14 = vadd.f32 %v737_v9, %v658_v5  ;;  %v759_v15 = vadd.f32 %v758_v61, %v757_v59 }
  0xec   :  { %v618_v62 = vpop.f32.mrf.mxu1 }
  0xed   :  { %v540_v21 = vadd.f32 %v759_v15, %v499_v14 }
  0xee   :  { %v788_v0 = vpop.f32.mrf.mxu1 }
  0xf0   :  { %v621_v1 = vpop.f32.mrf.mxu1 }
  0xf2   :  { %v789_v3 = vpop.f32.mrf.mxu1 }
 0x102   :  { %v776_v10 = vpop.f32.mrf.mxu0 }
 0x104   :  { %v777_v12 = vpop.f32.mrf.mxu0 }
 0x105   :  { %v778_v16 = vadd.f32 %v777_v12, %v776_v10 }
 0x106   :  { %v779_v17 = vpop.f32.mrf.mxu0 }
 0x107   :  { %v578_v19 = vadd.f32 %v778_v16, %v537_v13 }
 0x108   :  { %v780_v20 = vpop.f32.mrf.mxu0 }
 0x109   :  { %v781_v22 = vadd.f32 %v780_v20, %v779_v17  ;;  %v619_v23 = vadd.f32 %v618_v62, %v578_v19 }
 0x10b   :  { %v581_v24 = vadd.f32 %v781_v22, %v540_v21  ;;  %v628_v25 = vmax.f32 %v619_v23, 0.0 }
 0x10d   :  { %v630_v26 = vsel %vm627_vm2, %v628_v25, -1e+30  ;;  %v622_v27 = vadd.f32 %v621_v1, %v581_v24 }
 0x10e   :  { %632 = vmax.xlane.f32.xlu0 %v630_v26 }
 0x10f   :  { %v629_v28 = vmax.f32 %v622_v27, 0.0 }
 0x111   :  { %v631_v29 = vsel %vm627_vm2, %v629_v28, -1e+30 }
 0x112   :  { %634 = vmax.xlane.f32.xlu0 %v631_v29 }
 0x197   :  { %v633_v30 = vpop.xlane.xlu0 %632 }
 0x198   :  { %v636_v31 = vsub.f32 %v630_v26, %v633_v30 }
 0x19a   :  { %v638_v32 = vmul.f32 1.442695, %v636_v31 }
 0x19b   :  { %v635_v33 = vpop.xlane.xlu0 %634 }
 0x19c   :  { %v637_v34 = vsub.f32 %v631_v29, %v635_v33  ;;  %851 = vpow2.f32 %v638_v32 }
 0x19e   :  { %v640_v35 = vmul.f32 1.442695, %v637_v34 }
 0x1a0   :  { %853 = vpow2.f32 %v640_v35 }
 0x1a9   :  { %v852_v36 = vpop.eup %851 }
 0x1aa   :  { %642 = vadd.xlane.f32.xlu1 %v852_v36 }
 0x1ad   :  { %v854_v37 = vpop.eup %853 }
 0x1ae   :  { %644 = vadd.xlane.f32.xlu1 %v854_v37 }
 0x233   :  { %v643_v38 = vpop.xlane.xlu1 %642 }
 0x234   :  { %855 = vlog2.f32 %v643_v38 }
 0x237   :  { %v645_v39 = vpop.xlane.xlu1 %644 }
 0x238   :  { %857 = vlog2.f32 %v645_v39 }
 0x241   :  { %v856_v40 = vpop.eup %855 }
 0x242   :  { %v647_v41 = vmul.f32 0.6931472, %v856_v40 }
 0x244   :  { %v650_v42 = vsub.f32 %v636_v31, %v647_v41 }
 0x245   :  { %v858_v43 = vpop.eup %857 }
 0x246   :  { %652 = vst [vmem:[%s1061_s3] sm:$0xff] %v650_v42  ;;  %v649_v44 = vmul.f32 0.6931472, %v858_v43 }
 0x248   :  { %v651_v45 = vsub.f32 %v637_v34, %v649_v44 }
 0x24a   :  { %653 = vst [vmem:[%s1061_s3 + $0x8] sm:$0xff] %v651_v45 }

</bundles_post_ra>
